<compile_context>
chip_gen: v6e
topology: v6e:2x2x1
jax: 0.10.0
libtpu: 0.0.40
codegen_flags: <defaults>
</compile_context>

<pallas_src>
import jax
import jax.numpy as jnp
from jax import lax
from jax.experimental import pallas as pl
from jax.experimental.pallas import tpu as pltpu


def _fused_conv_add_kernel(w_ref, p_ref, o_ref):
    # o = W_all @ P_all_tile : single MXU dot, bias already folded into W_all/P_all.
    o_ref[...] = jnp.dot(
        w_ref[...], p_ref[...], preferred_element_type=jnp.float32
    ).astype(o_ref.dtype)


def _im2col_t_nchw(x, kh=3, kw=3, stride=2, pad=1):
    """x: (N, C, H, W) -> patches^T of shape (KH*KW*C, N*OH*OW), k-order (kh, kw, ci)."""
    n, c, h, w = x.shape
    oh = (h + 2 * pad - kh) // stride + 1
    ow = (w + 2 * pad - kw) // stride + 1
    xp = jnp.pad(x, ((0, 0), (0, 0), (pad, pad), (pad, pad)))
    rows = []
    for i in range(kh):
        for j in range(kw):
            tap = xp[:, :, i:i + stride * oh:stride, j:j + stride * ow:stride]  # (N,C,OH,OW)
            rows.append(jnp.transpose(tap, (1, 0, 2, 3)).reshape(c, n * oh * ow))  # (C, M)
    return jnp.concatenate(rows, axis=0), (n, oh, ow)


# TODO(synk): for large N/H/W, fuse im2col into the kernel (grid over output rows, build
# the 9-tap patch from a strided NHWC tile in VMEM) to avoid the ~10x HBM im2col round trip.
def model_with_multiple_inputs(x0, x1, w0, b0, w1, b1, use_bf16=False):
    """conv2d(x0; w0,b0) + conv2d(x1; w1,b1), stride=2, padding=1.  Inputs/outputs NCHW."""
    co = w0.shape[0]
    p0t, (n, oh, ow) = _im2col_t_nchw(x0)
    p1t, _ = _im2col_t_nchw(x1)
    m = n * oh * ow

    # torch weight (CO, CI, KH, KW) -> (CO, KH, KW, CI) -> (CO, K) to match patch k-order
    w0t = jnp.transpose(w0, (0, 2, 3, 1)).reshape(co, -1)
    w1t = jnp.transpose(w1, (0, 2, 3, 1)).reshape(co, -1)
    k = w0t.shape[1]  # 27

    # Stack both branches + folded bias along the contraction dim, pad K to a sublane
    # multiple in the same concatenate (no pad-after-concat pass).  Zeros are benign.
    k_total = ((2 * k + 1 + 7) // 8) * 8
    k_extra = k_total - (2 * k + 1)
    p_all = jnp.concatenate(
        [p0t, p1t, jnp.ones((1, m), p0t.dtype), jnp.zeros((k_extra, m), p0t.dtype)], axis=0
    )  # (K_total, M)
    w_all = jnp.concatenate(
        [w0t, w1t, (b0 + b1).reshape(co, 1), jnp.zeros((co, k_extra), w0t.dtype)], axis=1
    )  # (CO, K_total)

    # Pad M to a lane multiple and pick the M-tile (generation-agnostic: tiny VMEM footprint).
    m_pad = ((m + 127) // 128) * 128
    if m_pad != m:
        p_all = jnp.pad(p_all, ((0, 0), (0, m_pad - m)))
    tm = 512 if m_pad % 512 == 0 else (256 if m_pad % 256 == 0 else 128)

    if use_bf16:  # optional: halves DMA bytes; accumulation stays f32 inside the kernel
        p_all = p_all.astype(jnp.bfloat16)
        w_all = w_all.astype(jnp.bfloat16)

    out_t = pl.pallas_call(
        _fused_conv_add_kernel,
        out_shape=jax.ShapeDtypeStruct((co, m_pad), jnp.float32),
        grid=(m_pad // tm,),
        in_specs=[
            pl.BlockSpec((co, k_total), lambda i: (0, 0)),   # weights: resident, full array
            pl.BlockSpec((k_total, tm), lambda i: (0, i)),   # patch tile: pipelined over M
        ],
        out_specs=pl.BlockSpec((co, tm), lambda i: (0, i)),  # lane-dense (CO, TM) output
        compiler_params=pltpu.CompilerParams(dimension_semantics=("parallel",)),
    )(w_all, p_all)

    out = out_t[:, :m].reshape(co, n, oh, ow)
    return jnp.transpose(out, (1, 0, 2, 3))  # NCHW, matching PyTorch


def _reference(x0, x1, w0, b0, w1, b1):
    dn = lax.conv_dimension_numbers(x0.shape, w0.shape, ("NCHW", "OIHW", "NCHW"))
    y0 = lax.conv_general_dilated(x0, w0, (2, 2), [(1, 1), (1, 1)], dimension_numbers=dn)
    y1 = lax.conv_general_dilated(x1, w1, (2, 2), [(1, 1), (1, 1)], dimension_numbers=dn)
    return (y0 + b0.reshape(1, -1, 1, 1)) + (y1 + b1.reshape(1, -1, 1, 1))


if __name__ == "__main__":
    key = jax.random.PRNGKey(0)
    k0, k1, k2, k3, k4, k5 = jax.random.split(key, 6)

    N, CI, H, W, CO = 2, 3, 16, 16, 64
    x0 = jax.random.normal(k0, (N, CI, H, W), jnp.float32)
    x1 = jax.random.normal(k1, (N, CI, H, W), jnp.float32)
    # deterministic synthetic parameters (shapes from nn.Conv2d(3, 64, 3, stride=2, padding=1))
    w0 = jax.random.normal(k2, (CO, CI, 3, 3), jnp.float32) * 0.1
    w1 = jax.random.normal(k3, (CO, CI, 3, 3), jnp.float32) * 0.1
    b0 = jax.random.normal(k4, (CO,), jnp.float32) * 0.1
    b1 = jax.random.normal(k5, (CO,), jnp.float32) * 0.1

    out = model_with_multiple_inputs(x0, x1, w0, b0, w1, b1)
    jax.block_until_ready(out)

    assert out.shape == (N, CO, H // 2, W // 2), out.shape
    ref = _reference(x0, x1, w0, b0, w1, b1)
    assert jnp.allclose(out, ref, atol=1e-4, rtol=1e-4), float(jnp.max(jnp.abs(out - ref)))
    print("KERNEL_OK")
</pallas_src>

<mosaic_0001>
module attributes {stable_mosaic.version = 11 : i64} {
  func.func @_fused_conv_add_kernel(%arg0: i32, %arg1: memref<64x56xf32, #tpu.memory_space<vmem>>, %arg2: memref<56x128xf32, #tpu.memory_space<vmem>>, %arg3: memref<64x128xf32, #tpu.memory_space<vmem>>) attributes {dimension_semantics = [#tpu.dimension_semantics<parallel>], iteration_bounds = array<i64: 1>, scalar_prefetch = 0 : i64, scratch_operands = 0 : i64, tpu.core_type = #tpu.core_type<tc>, window_params = [{pipeline_mode = #tpu.pipeline_mode<synchronous>, transform_indices = @transform_0, window_bounds = array<i64: 64, 56>}, {transform_indices = @transform_1, window_bounds = array<i64: 56, 128>}, {transform_indices = @transform_2, window_bounds = array<i64: 64, 128>}]} {
    %c0 = arith.constant 0 : index
    %c0_0 = arith.constant 0 : index
    %0 = vector.load %arg1[%c0, %c0_0] : memref<64x56xf32, #tpu.memory_space<vmem>>, vector<64x56xf32>
    %c0_1 = arith.constant 0 : index
    %c0_2 = arith.constant 0 : index
    %1 = vector.load %arg2[%c0_1, %c0_2] : memref<56x128xf32, #tpu.memory_space<vmem>>, vector<56x128xf32>
    %cst = arith.constant dense<0.000000e+00> : vector<64x128xf32>
    %2 = tpu.matmul %0, %1, %cst {dimension_numbers = #tpu.dot_dimension_numbers<[1], [0], [0], [1], [0, 0, 1, 1], [], []>} : vector<64x56xf32>, vector<56x128xf32>, vector<64x128xf32> -> vector<64x128xf32>
    %c0_3 = arith.constant 0 : index
    %c0_4 = arith.constant 0 : index
    %3 = vector.load %arg3[%c0_3, %c0_4] : memref<64x128xf32, #tpu.memory_space<vmem>>, vector<64x128xf32>
    tpu.vector_store %arg3[%c0_3, %c0_4], %2 {strides = array<i32>} : memref<64x128xf32, #tpu.memory_space<vmem>>, vector<64x128xf32>,
    return
  }
  func.func @transform_0(%arg0: i32) -> (i32, i32) {
    %c0_i32 = arith.constant 0 : i32
    %c0_i32_0 = arith.constant 0 : i32
    %c0_i32_1 = arith.constant 0 : i32
    return %c0_i32, %c0_i32_0 : i32, i32
  }
  func.func @transform_1(%arg0: i32) -> (i32, i32) {
    %c0_i32 = arith.constant 0 : i32
    %c0_i32_0 = arith.constant 0 : i32
    return %c0_i32, %arg0 : i32, i32
  }
  func.func @transform_2(%arg0: i32) -> (i32, i32) {
    %c0_i32 = arith.constant 0 : i32
    %c0_i32_0 = arith.constant 0 : i32
    return %c0_i32, %arg0 : i32, i32
  }
}

</mosaic_0001>

<bundles_post_ra>
// kernel: tpu_custom_call.1
= control target key start
LH: loop header
LB: loop body
LE: loop exit
PB: predicated region body
PF: predicated region fallthrough
CT: control target
= control target key end

     0   :  { %s343_s0 = inlined_call_operand.vmem [shape: f32[64,56], index: 0, kind: input, shape index: {}]   ;;  %s344_s1 = inlined_call_operand.vmem [shape: f32[56,128], index: 1, kind: input, shape index: {}]   ;;  %s345_s2 = inlined_call_operand.hbm [shape: f32[64,128], index: 2, kind: output, shape index: {}]  }
   0x1   :  { %v26_v0 = vld [vmem:[%s344_s1 + $0x30] sm:$0xff]  ;;  %v25_v1 = vld [vmem:[%s344_s1 + $0x28] sm:$0xff]  ;;  %v24_v2 = vld [vmem:[%s344_s1 + $0x20] sm:$0xff] }
   0x2   :  { %204 = vmatprep.subr.mxu0 %v26_v0  ;;  %230 = vmatprep.subr.mxu1 %v26_v0  ;;  %v23_v3 = vld [vmem:[%s344_s1 + $0x18] sm:$0xff] }
   0x3   :  { %205 = vmatpush3.msra.mxu0 %v26_v0  ;;  %237 = vmatpush3.msra.mxu1 %v26_v0 }
   0x4   :  { %206 = vmatprep.subr.mxu0 %v25_v1  ;;  %231 = vmatprep.subr.mxu1 %v25_v1 }
   0x5   :  { %207 = vmatpush3.msra.mxu0 %v25_v1  ;;  %238 = vmatpush3.msra.mxu1 %v25_v1 }
   0x6   :  { %208 = vmatprep.subr.mxu0 %v24_v2  ;;  %232 = vmatprep.subr.mxu1 %v24_v2 }
   0x7   :  { %7 = vsyncpa [#allocation3], 0  ;;  %209 = vmatpush3.msra.mxu0 %v24_v2  ;;  %239 = vmatpush3.msra.mxu1 %v24_v2  ;;  %v22_v4 = vld [vmem:[%s344_s1 + $0x10] sm:$0xff]  ;;  %v21_v5 = vld [vmem:[%s344_s1 + $0x8] sm:$0xff]  ;;  %vm27_vm0 = vcmask 457728   ;;  %s269_s10 = smov [#allocation2]  }
   0x8   :  { %210 = vmatprep.subr.mxu0 %v23_v3  ;;  %233 = vmatprep.subr.mxu1 %v23_v3  ;;  %v20_v6 = vld [vmem:[%s344_s1] sm:$0xff]  ;;  %v13_v9 = vld [vmem:[%s343_s0 + $0x8] sm:$0xff]  ;;  %v14_v11 = vld [vmem:[%s343_s0 + $0x10] sm:$0xff]  ;;  %s170_s11 = sshll.u32 %s269_s10, 4  ;;  %s171_s11 = int_to_ptr.vmem [resolvable:$true] %s170_s11 }
   0x9   :  { %211 = vmatpush3.msra.mxu0 %v23_v3  ;;  %240 = vmatpush3.msra.mxu1 %v23_v3  ;;  %v12_v7 = vld [vmem:[%s343_s0] sm:$0xff]  ;;  %v17_v10 = vld [vmem:[%s343_s0 + $0x28] sm:$0xff]  ;;  %v18_v12 = vld [vmem:[%s343_s0 + $0x30] sm:$0xff]  ;;  %p252_p1 = scmp.lt.s32.totalorder %s171_s11, %s171_s11 }
   0xa   :  { %212 = vmatprep.subr.mxu0 %v22_v4  ;;  %234 = vmatprep.subr.mxu1 %v22_v4  ;;  %v16_v8 = vld [vmem:[%s343_s0 + $0x20] sm:$0xff]  ;;  %v15_v13 = vld [vmem:[%s343_s0 + $0x18] sm:$0xff] }
   0xb   :  { %213 = vmatpush3.msra.mxu0 %v22_v4  ;;  %241 = vmatpush3.msra.mxu1 %v22_v4  ;;  %v19_v14 = vld [vmem:[%s343_s0 + $0x38] sm:$0xff]  ;;  %s247_s0 = scalar_lea.vmem %s171_s11, 1024 }
   0xc   :  { %214 = vmatprep.subr.mxu0 %v21_v5  ;;  %235 = vmatprep.subr.mxu1 %v21_v5  ;;  %p248_p0 = scmp.ne.s32.totalorder %s171_s11, %s247_s0  ;;  %p253_p2 = scmp.lt.s32.totalorder %s247_s0, %s247_s0 }
   0xd   :  { %215 = vmatpush3.msra.mxu0 %v21_v5  ;;  %242 = vmatpush3.msra.mxu1 %v21_v5 }
   0xe   :  { %216 = vmatprep.subr.mxu0 %v20_v6  ;;  %236 = vmatprep.subr.mxu1 %v20_v6  ;;  %p254_p3 = por %p253_p2, %p252_p1 }
   0xf   :  { %217 = vmatpush3.msra.mxu0 %v20_v6  ;;  %243 = vmatpush3.msra.mxu1 %v20_v6 }
  0x10   :  { %218 = vmatprep.mubr.msk.f32.mxu0 %vm27_vm0, %v12_v7  ;;  %224 = vmatprep.mubr.msk.f32.mxu1 %vm27_vm0, %v16_v8  ;;  %p255_p4 = pnand %p254_p3, %p248_p0 }
  0x11   :  { %219 = vmatmul.mubr.msk.f32.vlgmr.msra.gmra.mxu0 %vm27_vm0, %v13_v9  ;;  %225 = vmatmul.mubr.msk.f32.vlgmr.msra.gmra.mxu1 %vm27_vm0, %v17_v10 }
  0x12   :  { %221 = vmatprep.mubr.msk.f32.mxu0 %vm27_vm0, %v14_v11  ;;  %227 = vmatprep.mubr.msk.f32.mxu1 %vm27_vm0, %v18_v12 }
  0x15   :  { %222 = vmatmul.mubr.msk.f32.gmra.mxu0 %vm27_vm0, %v15_v13  ;;  %228 = vmatmul.mubr.msk.f32.gmra.mxu1 %vm27_vm0, %v19_v14 }
  0xd1   :  { %v220_v15 = vpop.f32.mrf.mxu0  ;;  %v226_v16 = vpop.f32.mrf.mxu1 }
  0xd2   :  { %158 = vst [vmem:[#allocation2 + $0x8] sm:$0xff] %v220_v15  ;;  %162 = vst [vmem:[#allocation2 + $0x28] sm:$0xff] %v226_v16 }
  0xd3   :  { %v118_v17 = vpop.f32.mrf.mxu0  ;;  %v138_v18 = vpop.f32.mrf.mxu1 }
  0xd4   :  { %157 = vst [vmem:[#allocation2] sm:$0xff] %v118_v17  ;;  %161 = vst [vmem:[#allocation2 + $0x20] sm:$0xff] %v138_v18 }
  0xd5   :  { %v223_v19 = vpop.f32.mrf.mxu0  ;;  %v229_v20 = vpop.f32.mrf.mxu1 }
  0xd6   :  { %160 = vst [vmem:[#allocation2 + $0x18] sm:$0xff] %v223_v19  ;;  %164 = vst [vmem:[#allocation2 + $0x38] sm:$0xff] %v229_v20 }
  0xd7   :  { %v128_v21 = vpop.f32.mrf.mxu0  ;;  %v148_v22 = vpop.f32.mrf.mxu1 }
  0xd8   :  { %159 = vst [vmem:[#allocation2 + $0x10] sm:$0xff] %v128_v21  ;;  %163 = vst [vmem:[#allocation2 + $0x30] sm:$0xff] %v148_v22 }
  0xd9   :  { %258 = shalt.err (!%p255_p4)
}
  0xda   :  { %s270_s12 = smov 128   ;;  %s271_s13 = smov 8  }
  0xdb   :  { %176 = dma.vmem_to_hbm [thread:$0]  %s171_s11, 1024, %s345_s2, [#allocation3], %s270_s12, %s270_s12, %s271_s13  }
  0xdc   :  { %267 = dma.done.wait [#allocation3], 1024  }
  0xdd   :  { %268 = vsyncadd [#allocation3], 4294966272 }
  0xde   :  { %180 = vsyncpa [#allocation3], 1 }

</bundles_post_ra>
